<compile_context>
chip_gen: v6e
topology: v6e:2x2x1
jax: 0.10.0
libtpu: 0.0.40
codegen_flags: <defaults>
</compile_context>

<pallas_src>
import functools

import jax
import jax.numpy as jnp
from jax import lax
from jax.experimental import pallas as pl
from jax.experimental.pallas import tpu as pltpu

_LANES = 128
_SUBLANES = 8


def _mse_partial_kernel(a_ref, b_ref, o_ref, *, rows, tile_rows, acc_rows,
                        last_step, needs_mask):
    """Accumulate per-(sublane, lane) partial sums of (a-b)^2 into o_ref (acc_rows,128)."""
    i = pl.program_id(0)

    @pl.when(i == 0)
    def _init():
        o_ref[...] = jnp.zeros_like(o_ref)

    d = a_ref[...].astype(jnp.float32) - b_ref[...].astype(jnp.float32)
    sq = d * d

    def _accumulate(vals):
        # Grouping whole (8,128) tiles keeps the reshape a pure relabeling; the axis-0
        # reduce is elementwise VPU adds across vregs into acc_rows/8 independent
        # chains (no per-step cross-lane work).
        o_ref[...] += vals.reshape(-1, acc_rows, _LANES).sum(axis=0)

    if needs_mask:
        # Only the ragged last tile pays for iota/compare/select; steady state is
        # unmasked so the VALU slot stays below the HBM-matching rate (bf16 case).
        @pl.when(i < last_step)
        def _steady():
            _accumulate(sq)

        @pl.when(i == last_step)
        def _ragged():
            row_ids = (lax.broadcasted_iota(jnp.int32, sq.shape, 0)
                       + last_step * tile_rows)
            _accumulate(jnp.where(row_ids < rows, sq, jnp.float32(0.0)))
    else:
        _accumulate(sq)


def _target_block_bytes():
    """Per-input block bytes, generation-aware (bigger on v6e/v7x, conservative else)."""
    try:
        kind = jax.devices()[0].device_kind.lower()
    except Exception:
        return 2 << 20
    if ("v6" in kind) or ("v7" in kind):
        return 4 << 20   # 2 inputs x 2 buffers x 4 MiB = 16 MiB < 32 MiB scoped VMEM
    return 2 << 20       # v5e and older/unknown: stay well under the 16 MiB default


def l2_similarity_loss(feature1, feature2):
    """Pallas MSE loss: mean squared error between two same-shaped tensors."""
    assert feature1.shape == feature2.shape, "MSELoss requires matching shapes"
    total = int(feature1.size)
    assert total > 0

    f1 = jnp.ravel(feature1)   # free reshape of the contiguous buffer (no slice)
    f2 = jnp.ravel(feature2)

    # Zero-pad to a lane multiple: both pads are zero so (0-0)^2 contributes nothing,
    # no lane mask needed, and the true `total` is used for the mean.
    # TODO(synk): for non-128-aligned totals this pad still materializes one copy per
    # input; a raw-HBM (memory_space=pl.ANY) manual-DMA kernel would be fully zero-copy.
    rem = total % _LANES
    if rem:
        pad = _LANES - rem
        f1 = jnp.pad(f1, (0, pad))
        f2 = jnp.pad(f2, (0, pad))

    rows = f1.size // _LANES
    itemsize = jnp.dtype(feature1.dtype).itemsize

    target_bytes = _target_block_bytes()
    tile_rows = max(
        _SUBLANES,
        (target_bytes // (_LANES * itemsize)) // _SUBLANES * _SUBLANES,
    )
    tile_rows = min(tile_rows, pl.cdiv(rows, _SUBLANES) * _SUBLANES)
    acc_rows = 32 if tile_rows % 32 == 0 else _SUBLANES

    steps = pl.cdiv(rows, tile_rows)
    needs_mask = (rows % tile_rows) != 0
    block_bytes = tile_rows * _LANES * itemsize

    a2 = f1.reshape(rows, _LANES)   # free reshape (full array, no prefix slice)
    b2 = f2.reshape(rows, _LANES)

    kernel = functools.partial(
        _mse_partial_kernel,
        rows=rows,
        tile_rows=tile_rows,
        acc_rows=acc_rows,
        last_step=steps - 1,
        needs_mask=needs_mask,
    )

    partial = pl.pallas_call(
        kernel,
        out_shape=jax.ShapeDtypeStruct((acc_rows, _LANES), jnp.float32),
        grid_spec=pltpu.PrefetchScalarGridSpec(
            num_scalar_prefetch=0,
            grid=(steps,),
            in_specs=[
                pl.BlockSpec((tile_rows, _LANES), lambda i: (i, 0)),
                pl.BlockSpec((tile_rows, _LANES), lambda i: (i, 0)),
            ],
            out_specs=pl.BlockSpec((acc_rows, _LANES), lambda i: (0, 0)),
        ),
        compiler_params=pltpu.CompilerParams(
            dimension_semantics=("arbitrary",),
            vmem_limit_bytes=max(32 << 20, 4 * block_bytes + (4 << 20)),
        ),
        cost_estimate=pl.CostEstimate(
            flops=3 * rows * _LANES,
            transcendentals=0,
            bytes_accessed=2 * rows * _LANES * itemsize + acc_rows * _LANES * 4,
        ),
    )(a2, b2)

    return jnp.sum(partial) / jnp.float32(total)


if __name__ == "__main__":
    key = jax.random.PRNGKey(0)
    k1, k2 = jax.random.split(key)

    loss_fn = jax.jit(l2_similarity_loss)

    # Small NCHW feature maps, consistent with the module's generic inputs.
    shape = (2, 4, 16, 16)
    feature1 = jax.random.normal(k1, shape, dtype=jnp.float32)
    feature2 = jax.random.normal(k2, shape, dtype=jnp.float32)

    loss = jax.block_until_ready(loss_fn(feature1, feature2))
    ref = jnp.mean((feature1 - feature2) ** 2)
    assert jnp.allclose(loss, ref, rtol=1e-5, atol=1e-6), (loss, ref)

    # Ragged (non-multiple-of-128) size exercises the zero-pad + last-tile mask path.
    shape2 = (3, 5, 7)
    g1 = jax.random.normal(k1, shape2, dtype=jnp.float32)
    g2 = jax.random.normal(k2, shape2, dtype=jnp.float32)
    loss2 = jax.block_until_ready(loss_fn(g1, g2))
    ref2 = jnp.mean((g1 - g2) ** 2)
    assert jnp.allclose(loss2, ref2, rtol=1e-5, atol=1e-6), (loss2, ref2)

    print("KERNEL_OK")
</pallas_src>

<mosaic_0001>
module attributes {stable_mosaic.version = 11 : i64} {
  func.func @_mse_partial_kernel(%arg0: i32, %arg1: memref<16x128xf32, #tpu.memory_space<vmem>>, %arg2: memref<16x128xf32, #tpu.memory_space<vmem>>, %arg3: memref<8x128xf32, #tpu.memory_space<vmem>>) attributes {dimension_semantics = [#tpu.dimension_semantics<arbitrary>], iteration_bounds = array<i64: 1>, scalar_prefetch = 0 : i64, scratch_operands = 0 : i64, tpu.core_type = #tpu.core_type<tc>, window_params = [{transform_indices = @transform_0, window_bounds = array<i64: 16, 128>}, {transform_indices = @transform_1, window_bounds = array<i64: 16, 128>}, {pipeline_mode = #tpu.pipeline_mode<synchronous>, transform_indices = @transform_2, window_bounds = array<i64: 8, 128>}]} {
    %c0_i32 = arith.constant 0 : i32
    %0 = arith.cmpi eq, %arg0, %c0_i32 : i32
    %1 = arith.extui %0 : i1 to i32
    %c0_i32_0 = arith.constant 0 : i32
    %2 = arith.cmpi ne, %1, %c0_i32_0 : i32
    scf.if %2 {
      %cst_8 = arith.constant 0.000000e+00 : f32
      %12 = vector.broadcast %cst_8 : f32 to vector<8x128xf32>
      %c0_9 = arith.constant 0 : index
      %c0_10 = arith.constant 0 : index
      %13 = vector.load %arg3[%c0_9, %c0_10] : memref<8x128xf32, #tpu.memory_space<vmem>>, vector<8x128xf32>
      tpu.vector_store %arg3[%c0_9, %c0_10], %12 {strides = array<i32>} : memref<8x128xf32, #tpu.memory_space<vmem>>, vector<8x128xf32>,
    } else {
    }
    %c0 = arith.constant 0 : index
    %c0_1 = arith.constant 0 : index
    %3 = vector.load %arg1[%c0, %c0_1] : memref<16x128xf32, #tpu.memory_space<vmem>>, vector<16x128xf32>
    %c0_2 = arith.constant 0 : index
    %c0_3 = arith.constant 0 : index
    %4 = vector.load %arg2[%c0_2, %c0_3] : memref<16x128xf32, #tpu.memory_space<vmem>>, vector<16x128xf32>
    %5 = arith.subf %3, %4 : vector<16x128xf32>
    %6 = arith.mulf %5, %5 : vector<16x128xf32>
    %c0_4 = arith.constant 0 : index
    %c0_5 = arith.constant 0 : index
    %7 = vector.load %arg3[%c0_4, %c0_5] : memref<8x128xf32, #tpu.memory_space<vmem>>, vector<8x128xf32>
    %8 = vector.shape_cast %6 : vector<16x128xf32> to vector<2x8x128xf32>
    %cst = arith.constant dense<0.000000e+00> : vector<8x128xf32>
    %9 = vector.multi_reduction <add>, %8, %cst [0] : vector<2x8x128xf32> to vector<8x128xf32>
    %10 = arith.addf %7, %9 : vector<8x128xf32>
    %c0_6 = arith.constant 0 : index
    %c0_7 = arith.constant 0 : index
    %11 = vector.load %arg3[%c0_6, %c0_7] : memref<8x128xf32, #tpu.memory_space<vmem>>, vector<8x128xf32>
    tpu.vector_store %arg3[%c0_6, %c0_7], %10 {strides = array<i32>} : memref<8x128xf32, #tpu.memory_space<vmem>>, vector<8x128xf32>,
    return
  }
  func.func @transform_0(%arg0: i32) -> (i32, i32) {
    %c0_i32 = arith.constant 0 : i32
    %c0_i32_0 = arith.constant 0 : i32
    return %arg0, %c0_i32 : i32, i32
  }
  func.func @transform_1(%arg0: i32) -> (i32, i32) {
    %c0_i32 = arith.constant 0 : i32
    %c0_i32_0 = arith.constant 0 : i32
    return %arg0, %c0_i32 : i32, i32
  }
  func.func @transform_2(%arg0: i32) -> (i32, i32) {
    %c0_i32 = arith.constant 0 : i32
    %c0_i32_0 = arith.constant 0 : i32
    %c0_i32_1 = arith.constant 0 : i32
    return %c0_i32, %c0_i32_0 : i32, i32
  }
}

</mosaic_0001>

<bundles_post_ra>
// kernel: l2_similarity_loss.1
= control target key start
LH: loop header
LB: loop body
LE: loop exit
PB: predicated region body
PF: predicated region fallthrough
CT: control target
= control target key end

     0   :  { %s63_s0 = inlined_call_operand.vmem [shape: f32[16,128], index: 0, kind: input, shape index: {}]   ;;  %s64_s1 = inlined_call_operand.vmem [shape: f32[16,128], index: 1, kind: input, shape index: {}]   ;;  %s65_s2 = inlined_call_operand.vmem [shape: f32[8,128], index: 2, kind: output, shape index: {}]  }
   0x1   :  { %v16_v0 = vld [vmem:[%s63_s0] sm:$0xff]  ;;  %v17_v1 = vld [vmem:[%s63_s0 + $0x8] sm:$0xff] }
   0x2   :  { %v18_v2 = vld [vmem:[%s64_s1] sm:$0xff]  ;;  %v19_v3 = vld [vmem:[%s64_s1 + $0x8] sm:$0xff] }
   0x3   :  { %v20_v4 = vsub.f32 %v16_v0, %v18_v2  ;;  %v21_v5 = vsub.f32 %v17_v1, %v19_v3 }
   0x5   :  { %v22_v6 = vmul.f32 %v20_v4, %v20_v4  ;;  %v23_v7 = vmul.f32 %v21_v5, %v21_v5 }
   0x7   :  { %v25_v8 = vadd.f32 %v23_v7, %v22_v6 }
   0x9   :  { %27 = vst [vmem:[%s65_s2] sm:$0xff] %v25_v8 }

</bundles_post_ra>
